<compile_context>
chip_gen: v7x
topology: tpu7x:2x2x1
jax: 0.10.0
libtpu: 0.0.40
codegen_flags: <defaults>
</compile_context>

<pallas_src>
import math

import jax
import jax.numpy as jnp
from jax.experimental import pallas as pl
from jax.experimental.pallas import tpu as pltpu


def _mha_head_kernel(xq_ref, xkv_ref,
                     wq_ref, bq_ref, wk_ref, bk_ref, wv_ref, bv_ref,
                     wo_ref, bo_ref,
                     o_ref, acc_ref):
    """One grid step = (batch b, query tile i, head h).

    xq_ref  : (1, tq, E)   query rows of this tile
    xkv_ref : (1, L,  E)   full sequence (source of keys / values)
    wq_ref  : (1, E, Dh)   W_q^T for head h (1/sqrt(Dh) folded in)
    bq_ref  : (1, 1, Dh)   scaled q bias for head h
    wk_ref  : (1, E, Dh)   W_k^T for head h      bk_ref : (1, 1, Dh)
    wv_ref  : (1, E, Dh)   W_v^T for head h      bv_ref : (1, 1, Dh)
    wo_ref  : (1, Dh, E)   head-h slice of W_out^T
    bo_ref  : (1, E)       out_proj bias
    o_ref   : (1, tq, E)   output tile (written on the last head)
    acc_ref : (tq, E) f32  accumulator across the head grid axis
    """
    h = pl.program_id(2)

    xq = xq_ref[0]                       # (tq, E), input dtype
    xkv = xkv_ref[0]                     # (L,  E), input dtype
    dt = xq.dtype

    # Per-head projections: operands stay in the input dtype, f32 accumulation
    # on the MXU.  Scale is already folded into wq / bq.
    q = (jnp.dot(xq, wq_ref[0], preferred_element_type=jnp.float32)
         + bq_ref[0]).astype(dt)                                    # (tq, Dh)
    k = (jnp.dot(xkv, wk_ref[0], preferred_element_type=jnp.float32)
         + bk_ref[0]).astype(dt)                                    # (L, Dh)
    v = (jnp.dot(xkv, wv_ref[0], preferred_element_type=jnp.float32)
         + bv_ref[0]).astype(dt)                                    # (L, Dh)

    # Scores: contract the head dim of q and k directly (no in-kernel .T).
    s = jax.lax.dot_general(q, k, (((1,), (1,)), ((), ())),
                            preferred_element_type=jnp.float32)     # (tq, L)

    # Softmax: stats in f32; normalize with an EUP reciprocal + multiply.
    s = s - jnp.max(s, axis=-1, keepdims=True)
    p = jnp.exp(s)
    inv_l = pl.reciprocal(jnp.sum(p, axis=-1, keepdims=True), approx=True)
    p = (p * inv_l).astype(dt)

    o_h = jnp.dot(p, v, preferred_element_type=jnp.float32)         # (tq, Dh)

    # Head-h slice of the output projection, accumulated over heads.
    contrib = jnp.dot(o_h.astype(dt), wo_ref[0],
                      preferred_element_type=jnp.float32)           # (tq, E)

    @pl.when(h == 0)
    def _():
        acc_ref[...] = jnp.broadcast_to(bo_ref[...].astype(jnp.float32),
                                        acc_ref.shape)

    acc_ref[...] += contrib

    @pl.when(h == pl.num_programs(2) - 1)
    def _():
        o_ref[0] = acc_ref[...].astype(o_ref.dtype)


def multihead_attention(x, w_in, b_in, w_out, b_out, *, heads):
    """Self-attention matching torch.nn.MultiheadAttention(embed_size, heads).

    x     : (L, N, E)  (seq, batch, embed) -- PyTorch batch_first=False
    w_in  : (3E, E)    in_proj_weight ([Wq; Wk; Wv] stacked)
    b_in  : (3E,)      in_proj_bias
    w_out : (E, E)     out_proj.weight
    b_out : (E,)       out_proj.bias
    returns attn_output of shape (L, N, E)
    """
    L, N, E = x.shape
    assert E % heads == 0
    Dh = E // heads
    scale = 1.0 / math.sqrt(Dh)

    x_bse = jnp.transpose(x, (1, 0, 2))                  # (N, L, E)

    # One-time weight layout transforms (outside the kernel): pre-transpose so
    # the kernel computes x @ W directly, split per head so the head dimension
    # is selected by the BlockSpec (no lane slicing inside the kernel), and
    # fold the 1/sqrt(Dh) scale into the Q projection.
    def per_head_in_proj(w, b, s=1.0):
        w_t = (w.T * s).reshape(E, heads, Dh)            # (E, H, Dh)
        w_t = jnp.transpose(w_t, (1, 0, 2))              # (H, E, Dh)
        b_h = (b * s).reshape(heads, 1, Dh)              # (H, 1, Dh)
        return w_t.astype(x.dtype), b_h.astype(x.dtype)

    wq_t, bq = per_head_in_proj(w_in[:E],      b_in[:E], scale)
    wk_t, bk = per_head_in_proj(w_in[E:2 * E], b_in[E:2 * E])
    wv_t, bv = per_head_in_proj(w_in[2 * E:],  b_in[2 * E:])
    wo_t = jnp.transpose(w_out).reshape(heads, Dh, E).astype(x.dtype)  # (H,Dh,E)
    bo = b_out.reshape(1, E).astype(x.dtype)

    # Query tiling: gives multiple parallel grid steps (dual TensorCores on
    # v7x) and keeps the (tq, L) score tile small for long sequences.
    tq = 128 if L % 128 == 0 else L
    assert L % tq == 0
    n_q = L // tq

    # TODO(synk): for very long sequences also tile the KV axis with an
    # online-softmax (flash) inner loop so the (tq, L) score tile and the
    # (L, E) K/V source stay bounded on v7x's 64 MiB VMEM.

    itemsize = x.dtype.itemsize
    vmem_need = (
        2 * (tq * E + L * E) * itemsize                   # dbl-buffered x blocks
        + 2 * tq * E * itemsize                           # dbl-buffered out block
        + 2 * (3 * (E + 1) * Dh + Dh * E + E) * itemsize  # weight / bias blocks
        + (3 * tq * L + 4 * max(tq, L) * Dh + tq * E) * 4  # f32 intermediates
    )
    vmem_limit = int(min(max(2 * vmem_need, 32 * 1024 * 1024),
                         64 * 1024 * 1024))

    out_bse = pl.pallas_call(
        _mha_head_kernel,
        out_shape=jax.ShapeDtypeStruct((N, L, E), x.dtype),
        grid_spec=pltpu.PrefetchScalarGridSpec(
            num_scalar_prefetch=0,
            grid=(N, n_q, heads),
            in_specs=[
                pl.BlockSpec((1, tq, E), lambda b, i, h: (b, i, 0)),   # queries
                pl.BlockSpec((1, L, E),  lambda b, i, h: (b, 0, 0)),   # keys/vals
                pl.BlockSpec((1, E, Dh), lambda b, i, h: (h, 0, 0)),   # Wq^T[h]
                pl.BlockSpec((1, 1, Dh), lambda b, i, h: (h, 0, 0)),   # bq[h]
                pl.BlockSpec((1, E, Dh), lambda b, i, h: (h, 0, 0)),   # Wk^T[h]
                pl.BlockSpec((1, 1, Dh), lambda b, i, h: (h, 0, 0)),   # bk[h]
                pl.BlockSpec((1, E, Dh), lambda b, i, h: (h, 0, 0)),   # Wv^T[h]
                pl.BlockSpec((1, 1, Dh), lambda b, i, h: (h, 0, 0)),   # bv[h]
                pl.BlockSpec((1, Dh, E), lambda b, i, h: (h, 0, 0)),   # Wout^T[h]
                pl.BlockSpec((1, E),     lambda b, i, h: (0, 0)),      # b_out
            ],
            out_specs=pl.BlockSpec((1, tq, E), lambda b, i, h: (b, i, 0)),
            scratch_shapes=[pltpu.VMEM((tq, E), jnp.float32)],
        ),
        compiler_params=pltpu.CompilerParams(
            dimension_semantics=("parallel", "parallel", "arbitrary"),
            vmem_limit_bytes=vmem_limit,
        ),
    )(x_bse, x_bse, wq_t, bq, wk_t, bk, wv_t, bv, wo_t, bo)

    return jnp.transpose(out_bse, (1, 0, 2))             # (L, N, E)


def _reference(x, w_in, b_in, w_out, b_out, *, heads):
    """Pure-JAX reference matching torch.nn.MultiheadAttention forward."""
    L, N, E = x.shape
    Dh = E // heads
    qkv = jnp.einsum("lne,fe->lnf", x, w_in) + b_in       # (L, N, 3E)
    q, k, v = qkv[..., :E], qkv[..., E:2 * E], qkv[..., 2 * E:]

    def split(t):  # (L, N, E) -> (N, H, L, Dh)
        return jnp.transpose(t.reshape(L, N, heads, Dh), (1, 2, 0, 3))

    q, k, v = split(q), split(k), split(v)
    s = jnp.einsum("nhld,nhmd->nhlm", q, k) / math.sqrt(Dh)
    p = jax.nn.softmax(s, axis=-1)
    o = jnp.einsum("nhlm,nhmd->nhld", p, v)               # (N, H, L, Dh)
    o = jnp.transpose(o, (2, 0, 1, 3)).reshape(L, N, E)
    return jnp.einsum("lne,fe->lnf", o, w_out) + b_out


if __name__ == "__main__":
    # Small shapes consistent with nn.MultiheadAttention(embed_size, heads).
    seq_len, batch, embed_size, heads = 8, 2, 32, 4

    key = jax.random.PRNGKey(0)
    kx, k1, k2, k3, k4 = jax.random.split(key, 5)

    x = jax.random.normal(kx, (seq_len, batch, embed_size), dtype=jnp.float32)

    # Deterministic parameter init, shapes match PyTorch:
    #   in_proj_weight (3E, E), in_proj_bias (3E,), out_proj (E, E), bias (E,)
    lim = math.sqrt(6.0 / (embed_size + embed_size))
    w_in = jax.random.uniform(k1, (3 * embed_size, embed_size),
                              minval=-lim, maxval=lim, dtype=jnp.float32)
    b_in = jax.random.uniform(k2, (3 * embed_size,),
                              minval=-0.1, maxval=0.1, dtype=jnp.float32)
    w_out = jax.random.uniform(k3, (embed_size, embed_size),
                               minval=-lim, maxval=lim, dtype=jnp.float32)
    b_out = jax.random.uniform(k4, (embed_size,),
                               minval=-0.1, maxval=0.1, dtype=jnp.float32)

    out = multihead_attention(x, w_in, b_in, w_out, b_out, heads=heads)
    out = jax.block_until_ready(out)

    ref = _reference(x, w_in, b_in, w_out, b_out, heads=heads)
    assert out.shape == (seq_len, batch, embed_size)
    # approx=True softmax reciprocal (EUP path) trades a few ULPs versus the
    # exact f32 reference, hence the slightly relaxed tolerance.
    assert jnp.allclose(out, ref, atol=5e-3, rtol=5e-3), "mismatch vs reference"

    print("KERNEL_OK")
</pallas_src>

<mosaic_0001>
module attributes {stable_mosaic.version = 11 : i64} {
  func.func @_mha_head_kernel(%arg0: i32, %arg1: i32, %arg2: i32, %arg3: memref<1x8x32xf32, #tpu.memory_space<vmem>>, %arg4: memref<1x8x32xf32, #tpu.memory_space<vmem>>, %arg5: memref<1x32x8xf32, #tpu.memory_space<vmem>>, %arg6: memref<1x1x8xf32, #tpu.memory_space<vmem>>, %arg7: memref<1x32x8xf32, #tpu.memory_space<vmem>>, %arg8: memref<1x1x8xf32, #tpu.memory_space<vmem>>, %arg9: memref<1x32x8xf32, #tpu.memory_space<vmem>>, %arg10: memref<1x1x8xf32, #tpu.memory_space<vmem>>, %arg11: memref<1x8x32xf32, #tpu.memory_space<vmem>>, %arg12: memref<1x32xf32, #tpu.memory_space<vmem>>, %arg13: memref<1x8x32xf32, #tpu.memory_space<vmem>>, %arg14: memref<8x32xf32, #tpu.memory_space<vmem>>) attributes {dimension_semantics = [#tpu.dimension_semantics<parallel>, #tpu.dimension_semantics<parallel>, #tpu.dimension_semantics<arbitrary>], iteration_bounds = array<i64: 2, 1, 4>, scalar_prefetch = 0 : i64, scratch_operands = 1 : i64, tpu.core_type = #tpu.core_type<tc>, window_params = [{transform_indices = @transform_0, window_bounds = array<i64: 1, 8, 32>}, {transform_indices = @transform_1, window_bounds = array<i64: 1, 8, 32>}, {transform_indices = @transform_2, window_bounds = array<i64: 1, 32, 8>}, {transform_indices = @transform_3, window_bounds = array<i64: 1, 1, 8>}, {transform_indices = @transform_4, window_bounds = array<i64: 1, 32, 8>}, {transform_indices = @transform_5, window_bounds = array<i64: 1, 1, 8>}, {transform_indices = @transform_6, window_bounds = array<i64: 1, 32, 8>}, {transform_indices = @transform_7, window_bounds = array<i64: 1, 1, 8>}, {transform_indices = @transform_8, window_bounds = array<i64: 1, 8, 32>}, {pipeline_mode = #tpu.pipeline_mode<synchronous>, transform_indices = @transform_9, window_bounds = array<i64: 1, 32>}, {transform_indices = @transform_10, window_bounds = array<i64: 1, 8, 32>}]} {
    %c0 = arith.constant 0 : index
    %c0_0 = arith.constant 0 : index
    %c0_1 = arith.constant 0 : index
    %0 = vector.load %arg3[%c0, %c0_0, %c0_1] : memref<1x8x32xf32, #tpu.memory_space<vmem>>, vector<1x8x32xf32>
    %1 = vector.shape_cast %0 : vector<1x8x32xf32> to vector<8x32xf32>
    %c0_2 = arith.constant 0 : index
    %c0_3 = arith.constant 0 : index
    %c0_4 = arith.constant 0 : index
    %2 = vector.load %arg4[%c0_2, %c0_3, %c0_4] : memref<1x8x32xf32, #tpu.memory_space<vmem>>, vector<1x8x32xf32>
    %3 = vector.shape_cast %2 : vector<1x8x32xf32> to vector<8x32xf32>
    %c0_5 = arith.constant 0 : index
    %c0_6 = arith.constant 0 : index
    %c0_7 = arith.constant 0 : index
    %4 = vector.load %arg5[%c0_5, %c0_6, %c0_7] : memref<1x32x8xf32, #tpu.memory_space<vmem>>, vector<1x32x8xf32>
    %5 = vector.shape_cast %4 : vector<1x32x8xf32> to vector<32x8xf32>
    %cst = arith.constant dense<0.000000e+00> : vector<8x8xf32>
    %6 = tpu.matmul %1, %5, %cst {dimension_numbers = #tpu.dot_dimension_numbers<[1], [0], [0], [1], [0, 0, 1, 1], [], []>} : vector<8x32xf32>, vector<32x8xf32>, vector<8x8xf32> -> vector<8x8xf32>
    %c0_8 = arith.constant 0 : index
    %c0_9 = arith.constant 0 : index
    %c0_10 = arith.constant 0 : index
    %7 = vector.load %arg6[%c0_8, %c0_9, %c0_10] : memref<1x1x8xf32, #tpu.memory_space<vmem>>, vector<1x1x8xf32>
    %8 = vector.shape_cast %7 : vector<1x1x8xf32> to vector<1x8xf32>
    %9 = vector.broadcast %8 : vector<1x8xf32> to vector<8x8xf32>
    %10 = arith.addf %6, %9 : vector<8x8xf32>
    %c0_11 = arith.constant 0 : index
    %c0_12 = arith.constant 0 : index
    %c0_13 = arith.constant 0 : index
    %11 = vector.load %arg7[%c0_11, %c0_12, %c0_13] : memref<1x32x8xf32, #tpu.memory_space<vmem>>, vector<1x32x8xf32>
    %12 = vector.shape_cast %11 : vector<1x32x8xf32> to vector<32x8xf32>
    %cst_14 = arith.constant dense<0.000000e+00> : vector<8x8xf32>
    %13 = tpu.matmul %3, %12, %cst_14 {dimension_numbers = #tpu.dot_dimension_numbers<[1], [0], [0], [1], [0, 0, 1, 1], [], []>} : vector<8x32xf32>, vector<32x8xf32>, vector<8x8xf32> -> vector<8x8xf32>
    %c0_15 = arith.constant 0 : index
    %c0_16 = arith.constant 0 : index
    %c0_17 = arith.constant 0 : index
    %14 = vector.load %arg8[%c0_15, %c0_16, %c0_17] : memref<1x1x8xf32, #tpu.memory_space<vmem>>, vector<1x1x8xf32>
    %15 = vector.shape_cast %14 : vector<1x1x8xf32> to vector<1x8xf32>
    %16 = vector.broadcast %15 : vector<1x8xf32> to vector<8x8xf32>
    %17 = arith.addf %13, %16 : vector<8x8xf32>
    %c0_18 = arith.constant 0 : index
    %c0_19 = arith.constant 0 : index
    %c0_20 = arith.constant 0 : index
    %18 = vector.load %arg9[%c0_18, %c0_19, %c0_20] : memref<1x32x8xf32, #tpu.memory_space<vmem>>, vector<1x32x8xf32>
    %19 = vector.shape_cast %18 : vector<1x32x8xf32> to vector<32x8xf32>
    %cst_21 = arith.constant dense<0.000000e+00> : vector<8x8xf32>
    %20 = tpu.matmul %3, %19, %cst_21 {dimension_numbers = #tpu.dot_dimension_numbers<[1], [0], [0], [1], [0, 0, 1, 1], [], []>} : vector<8x32xf32>, vector<32x8xf32>, vector<8x8xf32> -> vector<8x8xf32>
    %c0_22 = arith.constant 0 : index
    %c0_23 = arith.constant 0 : index
    %c0_24 = arith.constant 0 : index
    %21 = vector.load %arg10[%c0_22, %c0_23, %c0_24] : memref<1x1x8xf32, #tpu.memory_space<vmem>>, vector<1x1x8xf32>
    %22 = vector.shape_cast %21 : vector<1x1x8xf32> to vector<1x8xf32>
    %23 = vector.broadcast %22 : vector<1x8xf32> to vector<8x8xf32>
    %24 = arith.addf %20, %23 : vector<8x8xf32>
    %cst_25 = arith.constant dense<0.000000e+00> : vector<8x8xf32>
    %25 = tpu.matmul %10, %17, %cst_25 {dimension_numbers = #tpu.dot_dimension_numbers<[1], [1], [0], [0], [0, 0, 1, 0], [], []>} : vector<8x8xf32>, vector<8x8xf32>, vector<8x8xf32> -> vector<8x8xf32>
    %cst_26 = arith.constant dense<0xFF800000> : vector<8xf32>
    %26 = vector.multi_reduction <maximumf>, %25, %cst_26 [1] : vector<8x8xf32> to vector<8xf32>
    %27 = vector.shape_cast %26 : vector<8xf32> to vector<8x1xf32>
    %28 = vector.broadcast %27 : vector<8x1xf32> to vector<8x8xf32>
    %29 = arith.subf %25, %28 : vector<8x8xf32>
    %30 = math.exp %29 : vector<8x8xf32>
    %cst_27 = arith.constant dense<0.000000e+00> : vector<8xf32>
    %31 = vector.multi_reduction <add>, %30, %cst_27 [1] : vector<8x8xf32> to vector<8xf32>
    %32 = vector.shape_cast %31 : vector<8xf32> to vector<8x1xf32>
    %33 = tpu.reciprocal %32 {approx = true} : vector<8x1xf32> -> vector<8x1xf32>
    %34 = vector.broadcast %33 : vector<8x1xf32> to vector<8x8xf32>
    %35 = arith.mulf %30, %34 : vector<8x8xf32>
    %cst_28 = arith.constant dense<0.000000e+00> : vector<8x8xf32>
    %36 = tpu.matmul %35, %24, %cst_28 {dimension_numbers = #tpu.dot_dimension_numbers<[1], [0], [0], [1], [0, 0, 1, 1], [], []>} : vector<8x8xf32>, vector<8x8xf32>, vector<8x8xf32> -> vector<8x8xf32>
    %c0_29 = arith.constant 0 : index
    %c0_30 = arith.constant 0 : index
    %c0_31 = arith.constant 0 : index
    %37 = vector.load %arg11[%c0_29, %c0_30, %c0_31] : memref<1x8x32xf32, #tpu.memory_space<vmem>>, vector<1x8x32xf32>
    %38 = vector.shape_cast %37 : vector<1x8x32xf32> to vector<8x32xf32>
    %cst_32 = arith.constant dense<0.000000e+00> : vector<8x32xf32>
    %39 = tpu.matmul %36, %38, %cst_32 {dimension_numbers = #tpu.dot_dimension_numbers<[1], [0], [0], [1], [0, 0, 1, 1], [], []>} : vector<8x8xf32>, vector<8x32xf32>, vector<8x32xf32> -> vector<8x32xf32>
    %c0_i32 = arith.constant 0 : i32
    %40 = arith.cmpi eq, %arg2, %c0_i32 : i32
    %41 = arith.extui %40 : i1 to i32
    %c0_i32_33 = arith.constant 0 : i32
    %42 = arith.cmpi ne, %41, %c0_i32_33 : i32
    scf.if %42 {
      %c0_39 = arith.constant 0 : index
      %c0_40 = arith.constant 0 : index
      %49 = vector.load %arg12[%c0_39, %c0_40] : memref<1x32xf32, #tpu.memory_space<vmem>>, vector<1x32xf32>
      %50 = vector.shape_cast %49 : vector<1x32xf32> to vector<1x32xf32>
      %51 = vector.broadcast %50 : vector<1x32xf32> to vector<8x32xf32>
      %c0_41 = arith.constant 0 : index
      %c0_42 = arith.constant 0 : index
      %52 = vector.load %arg14[%c0_41, %c0_42] : memref<8x32xf32, #tpu.memory_space<vmem>>, vector<8x32xf32>
      tpu.vector_store %arg14[%c0_41, %c0_42], %51 {strides = array<i32>} : memref<8x32xf32, #tpu.memory_space<vmem>>, vector<8x32xf32>,
    } else {
    }
    %c0_34 = arith.constant 0 : index
    %c0_35 = arith.constant 0 : index
    %43 = vector.load %arg14[%c0_34, %c0_35] : memref<8x32xf32, #tpu.memory_space<vmem>>, vector<8x32xf32>
    %44 = arith.addf %43, %39 : vector<8x32xf32>
    %c0_36 = arith.constant 0 : index
    %c0_37 = arith.constant 0 : index
    %45 = vector.load %arg14[%c0_36, %c0_37] : memref<8x32xf32, #tpu.memory_space<vmem>>, vector<8x32xf32>
    tpu.vector_store %arg14[%c0_36, %c0_37], %44 {strides = array<i32>} : memref<8x32xf32, #tpu.memory_space<vmem>>, vector<8x32xf32>,
    %c3_i32 = arith.constant 3 : i32
    %46 = arith.cmpi eq, %arg2, %c3_i32 : i32
    %47 = arith.extui %46 : i1 to i32
    %c0_i32_38 = arith.constant 0 : i32
    %48 = arith.cmpi ne, %47, %c0_i32_38 : i32
    scf.if %48 {
      %c0_39 = arith.constant 0 : index
      %c0_40 = arith.constant 0 : index
      %49 = vector.load %arg14[%c0_39, %c0_40] : memref<8x32xf32, #tpu.memory_space<vmem>>, vector<8x32xf32>
      %c0_41 = arith.constant 0 : index
      %c0_42 = arith.constant 0 : index
      %c0_43 = arith.constant 0 : index
      %50 = vector.load %arg13[%c0_41, %c0_42, %c0_43] : memref<1x8x32xf32, #tpu.memory_space<vmem>>, vector<1x8x32xf32>
      %51 = vector.shape_cast %50 : vector<1x8x32xf32> to vector<8x32xf32>
      %52 = vector.shape_cast %49 : vector<8x32xf32> to vector<1x8x32xf32>
      tpu.vector_store %arg13[%c0_41, %c0_42, %c0_43], %52 {strides = array<i32>} : memref<1x8x32xf32, #tpu.memory_space<vmem>>, vector<1x8x32xf32>,
    } else {
    }
    return
  }
  func.func @transform_0(%arg0: i32, %arg1: i32, %arg2: i32) -> (i32, i32, i32) {
    %c0_i32 = arith.constant 0 : i32
    %c0_i32_0 = arith.constant 0 : i32
    return %arg0, %arg1, %c0_i32 : i32, i32, i32
  }
  func.func @transform_1(%arg0: i32, %arg1: i32, %arg2: i32) -> (i32, i32, i32) {
    %c0_i32 = arith.constant 0 : i32
    %c0_i32_0 = arith.constant 0 : i32
    %c0_i32_1 = arith.constant 0 : i32
    return %arg0, %c0_i32, %c0_i32_0 : i32, i32, i32
  }
  func.func @transform_2(%arg0: i32, %arg1: i32, %arg2: i32) -> (i32, i32, i32) {
    %c0_i32 = arith.constant 0 : i32
    %c0_i32_0 = arith.constant 0 : i32
    %c0_i32_1 = arith.constant 0 : i32
    return %arg2, %c0_i32, %c0_i32_0 : i32, i32, i32
  }
  func.func @transform_3(%arg0: i32, %arg1: i32, %arg2: i32) -> (i32, i32, i32) {
    %c0_i32 = arith.constant 0 : i32
    %c0_i32_0 = arith.constant 0 : i32
    %c0_i32_1 = arith.constant 0 : i32
    return %arg2, %c0_i32, %c0_i32_0 : i32, i32, i32
  }
  func.func @transform_4(%arg0: i32, %arg1: i32, %arg2: i32) -> (i32, i32, i32) {
    %c0_i32 = arith.constant 0 : i32
    %c0_i32_0 = arith.constant 0 : i32
    %c0_i32_1 = arith.constant 0 : i32
    return %arg2, %c0_i32, %c0_i32_0 : i32, i32, i32
  }
  func.func @transform_5(%arg0: i32, %arg1: i32, %arg2: i32) -> (i32, i32, i32) {
    %c0_i32 = arith.constant 0 : i32
    %c0_i32_0 = arith.constant 0 : i32
    %c0_i32_1 = arith.constant 0 : i32
    return %arg2, %c0_i32, %c0_i32_0 : i32, i32, i32
  }
  func.func @transform_6(%arg0: i32, %arg1: i32, %arg2: i32) -> (i32, i32, i32) {
    %c0_i32 = arith.constant 0 : i32
    %c0_i32_0 = arith.constant 0 : i32
    %c0_i32_1 = arith.constant 0 : i32
    return %arg2, %c0_i32, %c0_i32_0 : i32, i32, i32
  }
  func.func @transform_7(%arg0: i32, %arg1: i32, %arg2: i32) -> (i32, i32, i32) {
    %c0_i32 = arith.constant 0 : i32
    %c0_i32_0 = arith.constant 0 : i32
    %c0_i32_1 = arith.constant 0 : i32
    return %arg2, %c0_i32, %c0_i32_0 : i32, i32, i32
  }
  func.func @transform_8(%arg0: i32, %arg1: i32, %arg2: i32) -> (i32, i32, i32) {
    %c0_i32 = arith.constant 0 : i32
    %c0_i32_0 = arith.constant 0 : i32
    %c0_i32_1 = arith.constant 0 : i32
    return %arg2, %c0_i32, %c0_i32_0 : i32, i32, i32
  }
  func.func @transform_9(%arg0: i32, %arg1: i32, %arg2: i32) -> (i32, i32) {
    %c0_i32 = arith.constant 0 : i32
    %c0_i32_0 = arith.constant 0 : i32
    %c0_i32_1 = arith.constant 0 : i32
    return %c0_i32, %c0_i32_0 : i32, i32
  }
  func.func @transform_10(%arg0: i32, %arg1: i32, %arg2: i32) -> (i32, i32, i32) {
    %c0_i32 = arith.constant 0 : i32
    %c0_i32_0 = arith.constant 0 : i32
    return %arg0, %arg1, %c0_i32 : i32, i32, i32
  }
}

</mosaic_0001>

<bundles_post_ra>
// kernel: tpu_custom_call.1
= control target key start
LH: loop header
LB: loop body
LE: loop exit
PB: predicated region body
PF: predicated region fallthrough
CT: control target
= control target key end

     0   :  { %s1774_s0 = inlined_call_operand.vmem [shape: f32[2,8,32], index: 0, kind: input, shape index: {}]   ;;  %s1775_s1 = inlined_call_operand.vmem [shape: f32[2,8,32], index: 1, kind: input, shape index: {}]   ;;  %s1776_s2 = inlined_call_operand.vmem [shape: f32[4,32,8], index: 2, kind: input, shape index: {}]   ;;  %s1777_s3 = inlined_call_operand.vmem [shape: f32[4,1,8], index: 3, kind: input, shape index: {}]   ;;  %s1778_s4 = inlined_call_operand.vmem [shape: f32[4,32,8], index: 4, kind: input, shape index: {}]   ;;  %s1779_s5 = inlined_call_operand.vmem [shape: f32[4,1,8], index: 5, kind: input, shape index: {}]   ;;  %s1780_s6 = inlined_call_operand.vmem [shape: f32[4,32,8], index: 6, kind: input, shape index: {}]   ;;  %s1781_s7 = inlined_call_operand.vmem [shape: f32[4,1,8], index: 7, kind: input, shape index: {}]   ;;  %s1782_s8 = inlined_call_operand.vmem [shape: f32[4,8,32], index: 8, kind: input, shape index: {}]   ;;  %s1783_s9 = inlined_call_operand.vmem [shape: f32[1,32], index: 9, kind: input, shape index: {}]   ;;  %s1784_s10 = inlined_call_operand.hbm [shape: f32[2,8,32], index: 10, kind: output, shape index: {}]  }
   0x1   :  { %1788 = sst [smem:[#allocation9_spill]] %s1776_s2 }
   0x2   :  { %1789 = sst [smem:[#allocation10_spill]] %s1778_s4 }
   0x3   :  { %15 = vsyncpa [#allocation4], 0 }
   0x4   :  { %17 = vsyncpa [#allocation4 + $0x1], 0  ;;  %s1565_s13 = smov 0   ;;  %s1567_s14 = smov 0  }
   0x5   :  { %s1569_s15 = smov 0   ;;  %s1571_s16 = smov 0  }
   0x6   :  { %s1573_s17 = smov 0   ;;  %s1575_s18 = smov 0  }
   0x7   :  { %s1577_s19 = smov 0   ;;  %s1579_s20 = smov 0  }
   0x8 LB: > { %1790 = sst [smem:[#allocation6_spill]] %s1500_s19  ;;  %s1210_s21 = sadd.s32 4294967295, %s1504_s20   ;;  %s1504_s20 = sphi %s1579_s20, %s23_s20   ;;  %s1500_s19 = sphi %s1577_s19, %s1800_s19   ;;  %s1496_s18 = sphi %s1575_s18, %s1805_s18   ;;  %s1492_s17 = sphi %s1573_s17, %s1798_s17   ;;  %s1488_s16 = sphi %s1571_s16, %s1804_s16   ;;  %s1484_s15 = sphi %s1569_s15, %s1803_s15   ;;  %s1480_s14 = sphi %s1567_s14, %s1802_s14   ;;  %s1476_s13 = sphi %s1565_s13, %s1801_s13  }
   0x9   : > { %s1211_s22 = sadd.s32 4294967294, %s1504_s20   ;;  %s35_s23 = sadd.s32 1, %s1496_s18 }
   0xa   : > { %p36_p0 = scmp.ge.s32.totalorder %s35_s23, 4  ;;  %s42_s24 = sadd.s32 1, %s1500_s19 }
   0xb   : > { %p318_p1 = scmp.ne.s32.totalorder %s1484_s15, %s1480_s14  ;;  %p319_p2 = scmp.eq.s32.totalorder %s1210_s21, 7 }
   0xc   : > { %s1807_s23 = smov (%p36_p0, %s35_s23), 0  ;;  %s1809_s24 = smov (!%p36_p0, %s42_s24), %s1500_s19 }
   0xd   : > { %1791 = sst [smem:[#allocation7_spill]] %s1807_s23  ;;  %p1614_p3 = por %p319_p2, %p318_p1 }
   0xe   : > { %p324_p4 = scmp.ne.s32.totalorder %s1480_s14, %s1476_s13  ;;  %p44_p5 = scmp.ge.s32.totalorder %s1809_s24, 2 }
   0xf   : > { %p325_p6 = scmp.eq.s32.totalorder %s1211_s22, 7  ;;  %p1214_p7 = scmp.ge.s32.totalorder %s1504_s20, 1 }
  0x10   : > { %p412_p8 = scmp.lt.s32.totalorder %s1504_s20, 9  ;;  %s1811_s24 = smov (%p44_p5, %s1809_s24), 0 }
  0x11   : > { %1793 = sst [smem:[#allocation8_spill]] %s1811_s24  ;;  %p1624_p9 = por %p325_p6, %p324_p4 }
  0x12   : > { %p413_p10 = pnand %p1214_p7, %p412_p8  ;;  %s303_s27 = ssub.s32 %s1500_s19, %s1811_s24 }
  0x13   : > { %s308_s28 = sadd.s32 1, %s1484_s15  ;;  %p306_p11 = scmp.eq.s32.totalorder %s303_s27, 0  ;;  %v1506_v0 = vmov (!%p413_p10), 0.0|0.0   ;;  %vm1507_vm0 = vmmov (!%p413_p10), 0   ;;  %v1508_v1 = vmov (!%p413_p10), 0.0   ;;  %vm536_vm1 = vcmask (!%p413_p10), 261120  }
  0x14   : > { %416 = sbr.rel (%p413_p10) target bundleno = 1246 (0x4de), region = 60  ;;  %p495_p12 = scmp.lt.s32.totalorder (!%p413_p10), %s1488_s16, 3  ;;  %1320 = vmatprep.subr.bf16.mxu1 (!%p413_p10), %v1506_v0  ;;  %1314 = vmatprep.subr.bf16.mxu0 (!%p413_p10), %v1506_v0  ;;  %vm775_vm2 = vcmask (!%p413_p10), 64512  }
  0x15   : > { %s1632_s29 = scalar_select %p306_p11, %s1484_s15, %s308_s28  }
  0x16   : > { %s1785_s30 = sand.u32 (!%p413_p10), 1, %s1480_s14   ;;  %1285 = vmatprep.mubr.msk.f32.mxu1 (!%p413_p10), %vm1507_vm0, %v1508_v1  ;;  %1274 = vmatprep.mubr.msk.f32.mxu0 (!%p413_p10), %vm1507_vm0, %v1508_v1  ;;  %p484_p13 = scmp.lt.s32.totalorder (!%p413_p10), %s1492_s17, 1 }
  0x17   : > { %s1639_s11 = sshll.u32 (!%p413_p10), %s1785_s30, 3  ;;  %s1795_s4 = sld [smem:[#allocation10_spill]] (!%p413_p10) }
  0x18   : > { %s1796_s2 = sld [smem:[#allocation9_spill]] (!%p413_p10)  ;;  %s483_s24 = scalar_lea.vmem (!%p413_p10), [#allocation3], %s1639_s11 }
  0x19   : > { %p1235_p0 = scmp.ne.s32.totalorder (!%p413_p10), %s1488_s16, 0 }
  0x1b   : > { %s1643_s12 = scalar_select %p495_p12, %s1488_s16, 3 }
  0x1c   : > { %s485_s19 = scalar_select %p484_p13, %s1492_s17, 1 }
  0x1d   : > { %s1651_s21 = sshll.u32 %s1643_s12, 5  ;;  %s502_s27 = scalar_lea.vmem %s1777_s3, %s1643_s12  ;;  %v1236_v50 = vld [vmem:[%s1783_s9] ss:$0 sm:$0xff] (!%p1235_p0) }
  0x1e   : > { %s507_s28 = scalar_lea.vmem %s1795_s4, %s1651_s21  ;;  %s499_s23 = scalar_lea.vmem %s1796_s2, %s1651_s21  ;;  %v1225_v17 = vld [vmem:[%s502_s27] ss:$0 sm:$0xff]  ;;  %1021 = vst.msk [vmem:[#allocation2] sm:$0xff] (!%p1235_p0), %vm536_vm1, %v1236_v50 }
  0x1f   : > { %v610_v2 = vld [vmem:[%s507_s28] sm:$0xff]  ;;  %v611_v3 = vld [vmem:[%s507_s28 + $0x8] sm:$0xff]  ;;  %v612_v4 = vld [vmem:[%s507_s28 + $0x10] sm:$0xff]  ;;  %s1216_s22 = sshll.u32 %s485_s19, 3  ;;  %s518_s19 = scalar_lea.vmem %s1781_s7, %s1643_s12 }
  0x20   : > { %v1321_v5 = vpack.c.bf16 %v611_v3, %v610_v2  ;;  %v525_v6 = vld [vmem:[%s499_s23] sm:$0xff]  ;;  %v526_v7 = vld [vmem:[%s499_s23 + $0x8] sm:$0xff]  ;;  %v613_v8 = vld [vmem:[%s507_s28 + $0x18] sm:$0xff]  ;;  %s494_s30 = scalar_lea.vmem %s1775_s1, %s1216_s22  ;;  %s490_s4 = scalar_lea.vmem %s1774_s0, %s1216_s22 }
  0x21   : > { %v1315_v9 = vpack.c.bf16 %v526_v7, %v525_v6  ;;  %v527_v10 = vld [vmem:[%s499_s23 + $0x10] sm:$0xff]  ;;  %v528_v11 = vld [vmem:[%s499_s23 + $0x18] sm:$0xff]  ;;  %v1324_v12 = vpack.c.bf16 %v613_v8, %v612_v4  ;;  %v524_v14 = vld [vmem:[%s494_s30] sm:$0xff]  ;;  %s510_s23 = scalar_lea.vmem %s1779_s5, %s1643_s12  ;;  %s515_s28 = scalar_lea.vmem %s1780_s6, %s1651_s21 }
  0x22   : > { %1322 = vmatpush3.bf16.msra.mxu1 %v1321_v5  ;;  %v1318_v13 = vpack.c.bf16 %v528_v11, %v527_v10  ;;  %v523_v15 = vld [vmem:[%s490_s4] sm:$0xff]  ;;  %v695_v25 = vld [vmem:[%s515_s28 + $0x8] sm:$0xff]  ;;  %v696_v26 = vld [vmem:[%s515_s28 + $0x10] sm:$0xff] }
  0x23   : > { %1316 = vmatpush3.bf16.msra.mxu0 %v1315_v9  ;;  %1323 = vmatprep.subr.bf16.mxu1 %v1506_v0  ;;  %v1227_v16 = vld [vmem:[%s510_s23] ss:$0 sm:$0xff]  ;;  %v697_v28 = vld [vmem:[%s515_s28 + $0x18] sm:$0xff]  ;;  %s1224_s23 = sshll.u32 %s1643_s12, 3 }
  0x24   : > { %1317 = vmatprep.subr.bf16.mxu0 %v1506_v0  ;;  %v694_v24 = vld [vmem:[%s515_s28] sm:$0xff]  ;;  %v1330_v29 = vpack.c.bf16 %v697_v28, %v696_v26  ;;  %s522_s27 = scalar_lea.vmem %s1782_s8, %s1224_s23 }
  0x25   : > { %v1327_v27 = vpack.c.bf16 %v695_v25, %v694_v24  ;;  %v1229_v39 = vld [vmem:[%s518_s19] ss:$0 sm:$0xff] }
  0x26   : > { %1325 = vmatpush3.bf16.msra.mxu1 %v1324_v12  ;;  %v936_v42 = vld [vmem:[%s522_s27] sm:$0xff] }
  0x27   : > { %1319 = vmatpush3.bf16.msra.mxu0 %v1318_v13  ;;  %1299 = vmatprep.subr.mxu1 %v1508_v1 }
  0x28   : > { %1326 = vmatprep.subr.bf16.mxu0 %v1506_v0 }
  0x29   : > { %1286 = vmatmul.mubr.msk.f32.vlgmr.msra.gmra.mrb[0].mxu1 %vm536_vm1, %v524_v14 }
  0x2a   : > { %1275 = vmatmul.mubr.msk.f32.vlgmr.msra.gmra.mrb[0].mxu0 %vm536_vm1, %v523_v15  ;;  %1301 = vmatprep.mubr.msk.f32.mxu1 %vm1507_vm0, %v1508_v1 }
  0x2b   : > { %1296 = vmatprep.mubr.msk.f32.mxu0 %vm1507_vm0, %v1508_v1  ;;  %1328 = vmatpush3.bf16.msra.mxu0 %v1327_v27 }
  0x2c   : > { %1329 = vmatprep.subr.bf16.mxu0 %v1506_v0 }
  0x2f   : > { %1331 = vmatpush3.bf16.msra.mxu0 %v1330_v29 }
  0x30   : > { %1309 = vmatprep.subr.mxu0 %v1508_v1 }
  0x32   : > { %1297 = vmatmul.mubr.msk.f32.vlgmr.msra.gmra.mrb[2].mxu0 %vm536_vm1, %v524_v14 }
  0x33   : > { %1311 = vmatprep.mubr.msk.f32.mxu0 %vm1507_vm0, %v1508_v1  ;;  %1310 = vmatpush3.msra.mxu0 %v936_v42 }
  0xfc   : > { %v690_v18 = vpop.f32.mrb[0].mxu1 }
  0xfd   : > { %v691_v19 = vadd.f32 %v1227_v16, %v690_v18  ;;  %v1287_v20 = vpop.f32.mrb[1].mxu1  ;;  %v606_v21 = vpop.f32.mrb[0].mxu0 }
  0xfe   : > { %v607_v22 = vadd.f32 %v1225_v17, %v606_v21  ;;  %v1276_v23 = vpop.f32.mrb[1].mxu0 }
  0xff   : > { %1300 = vmatpush3.xpose.msk.msra.mxu1 %vm775_vm2, %v691_v19 }
 0x100   : > { %1304 = vmatprep.subr.mxu1 %v1508_v1 }
 0x102   : > { %1302 = vmatmul.mubr.msk.f32.vlgmr.msra.gmra.mrb[2].mxu1 %vm775_vm2, %v607_v22 }
 0x103   : > { %1306 = vmatprep.mubr.msk.f32.mxu1 %vm1507_vm0, %v1508_v1 }
 0x105   : > { %v771_v38 = vpop.f32.mrb[2].mxu0 }
 0x106   : > { %v1298_v40 = vpop.f32.mrb[3].mxu0  ;;  %v772_v41 = vadd.f32 %v1229_v39, %v771_v38 }
 0x108   : > { %1305 = vmatpush3.msra.mxu1 %v772_v41 }
 0x1d5   : > { %v848_v30 = vpop.f32.mrb[2].mxu1 }
 0x1d6   : > { %v1303_v31 = vpop.f32.mrb[3].mxu1  ;;  %v852_v32 = vsel %vm775_vm2, %v848_v30, -inf }
 0x1d7   : > { %853 = vmax.xlane.f32.xlu0 %v852_v32 }
 0x264   : > { %v854_v33 = vpop.xlane.xlu0 %853 }
 0x265   : > { %v855_v34 = vsub.f32 %v848_v30, %v854_v33 }
 0x267   : > { %v856_v35 = vmul.f32 1.442695, %v855_v34 }
 0x269   : > { %1406 = vpow2.f32 %v856_v35 }
 0x273   : > { %v1407_v36 = vpop.eup %1406 }
 0x274   : > { %v858_v37 = vsel %vm775_vm2, %v1407_v36, 0.0 }
 0x275   : > { %859 = vadd.xlane.f32.xlu0 %v858_v37 }
 0x302   : > { %v860_v43 = vpop.xlane.xlu0 %859 }
 0x303   : > { %1408 = vrcp.f32 %v860_v43 }
 0x30d   : > { %v1409_v44 = vpop.eup %1408 }
 0x30e   : > { %v862_v45 = vmul.f32 %v1409_v44, %v1407_v36 }
 0x310   : > { %1307 = vmatmul.mubr.msk.f32.vlgmr.msra.gmra.mrb[4].mxu1 %vm775_vm2, %v862_v45 }
 0x3e3   : > { %v932_v46 = vpop.f32.mrb[4].mxu1 }
 0x3e4   : > { %v1308_v47 = vpop.f32.mrb[5].mxu1  ;;  %1312 = vmatmul.mubr.msk.f32.vlgmr.msra.gmra.mrb[4].mxu0 %vm775_vm2, %v932_v46 }
 0x4b2   : > { %1013 = sbr.rel (%p1235_p0) target bundleno = 1209 (0x4b9), region = 64 }
 0x4b7   : > { %v1006_v48 = vpop.f32.mrb[4].mxu0 }
 0x4b8   : > { %v1313_v49 = vpop.f32.mrb[5].mxu0 }
 0x4b9 PF: > { %v1022_v51 = vld [vmem:[#allocation2] sm:$0xff]  ;;  %p1237_p1 = scmp.ne.s32.totalorder %s1488_s16, 3 }
 0x4ba   : > { %v1023_v52 = vadd.f32 %v1022_v51, %v1006_v48 }
 0x4bb   : > { %1028 = sbr.rel (%p1237_p1) target bundleno = 1221 (0x4c5), region = 68 }
 0x4bc   : > { %1024 = vst.msk [vmem:[#allocation2] sm:$0xff] %vm536_vm1, %v1023_v52 }
 0x4c3   : > { %v1029_v53 = vld [vmem:[#allocation2] sm:$0xff] }
 0x4c4   : > { %1030 = vst.msk [vmem:[%s483_s24] sm:$0xff] %vm536_vm1, %v1029_v53 }
 0x4c5 PF: > { %s1239_s11 = sshll.u32 %s1492_s17, 7  ;;  %s1046_s19 = sshll.u32 %s483_s24, 4  ;;  %s1047_s19 = int_to_ptr.vmem [resolvable:$true] %s1046_s19 }
 0x4c6   : > { %s1725_s2 = scalar_lea.hbm %s1784_s10, %s1239_s11  ;;  %s1797_s23 = sand.u32 1, %s1480_s14  }
 0x4c7   : > { %s1032_s4 = scalar_lea.sflag [#allocation4], %s1797_s23  ;;  %s1410_s22 = scalar_lea.vmem %s1047_s19, 128 }
 0x4c8   : > { %p1411_p2 = scmp.ne.s32.totalorder %s1047_s19, %s1410_s22  ;;  %s1509_s16 = smov [#allocation3]  }
 0x4c9   : > { %s1414_s27 = sshll.u32 %s1509_s16, 4  ;;  %s1415_s27 = int_to_ptr.vmem [resolvable:$false] %s1414_s27 }
 0x4ca   : > { %p1412_p4 = pnand %p1411_p2, %p1614_p3  ;;  %s1416_s12 = scalar_lea.vmem %s1415_s27, 256 }
 0x4cb   : > { %p1417_p6 = scmp.lt.s32.totalorder %s1047_s19, %s1415_s27  ;;  %p1418_p7 = scmp.lt.s32.totalorder %s1416_s12, %s1410_s22 }
 0x4cc   : > { %p1413_p5 = pneg %p1412_p4 }
 0x4cd   : > { %p1419_p8 = por %p1418_p7, %p1417_p6 }
 0x4cf   : > { %p1420_p10 = pnand %p1419_p8, %p1413_p5 }
 0x4d1   : > { %1423 = shalt.err (!%p1420_p10)
}
 0x4d2   : > { %s1424_s17 = scalar_lea.hbm %s1725_s2, 128  ;;  %s1428_s11 = scalar_lea.hbm %s1784_s10, 256 }
 0x4d3   : > { %p1425_p11 = scmp.ne.s32.totalorder %s1725_s2, %s1424_s17  ;;  %p1429_p0 = scmp.lt.u32.totalorder %s1725_s2, %s1784_s10 }
 0x4d4   : > { %p1430_p1 = scmp.lt.u32.totalorder %s1428_s11, %s1424_s17  ;;  %p1432_p4 = scmp.lt.u32.totalorder %s1424_s17, %s1725_s2 }
 0x4d5   : > { %p1426_p12 = pnand %p1425_p11, %p1614_p3 }
 0x4d6   : > { %p1431_p2 = por %p1430_p1, %p1429_p0 }
 0x4d7   : > { %p1427_p13 = pneg %p1426_p12 }
 0x4d8   : > { %p1433_p5 = por %p1432_p4, %p1431_p2 }
 0x4da   : > { %p1434_p6 = pnand %p1433_p5, %p1427_p13 }
 0x4dc   : > { %1437 = shalt.err (!%p1434_p6)
}
 0x4dd   : > { %1332 = dma.vmem_to_hbm [thread:$0]  (%p1614_p3), %s1047_s19, 128, %s1725_s2, %s1032_s4  }
 0x4de PF: > { %p1338_p7 = scmp.ge.s32.totalorder %s1504_s20, 2  ;;  %s1058_s23 = sand.u32 1, %s1476_s13  }
 0x4df   : > { %s1059_s22 = scalar_lea.sflag [#allocation4], %s1058_s23 }
 0x4e0   : > { %p1335_p8 = pnand %p1338_p7, %p1624_p9 }
 0x4e2   : > { %1471 = dma.done.wait (!%p1335_p8), %s1059_s22, 128  }
 0x4e3   : > { %1473 = vsyncadd (!%p1335_p8), %s1059_s22, 4294967168  ;;  %s23_s20 = sadd.s32 1, %s1504_s20   ;;  %s1798_s17 = sld [smem:[#allocation6_spill]] }
 0x4e4   : > { %p20_p10 = scmp.ge.s32.totalorder %s23_s20, 10   ;;  %s1799_s25 = sld [smem:[#allocation7_spill]] }
 0x4e5   : > { %s1800_s19 = sld [smem:[#allocation8_spill]]  ;;  %s1801_s13 = smov %s1480_s14 }
 0x4e6   : > { %s1802_s14 = smov %s1484_s15  ;;  %s1803_s15 = smov %s1632_s29 }
 0x4e7   : > { %s1804_s16 = smov %s1496_s18  ;;  %22 = sbr.rel (!%p20_p10) target bundleno = 8 (0x8), region = 127 }
 0x4ea   : > { %s1805_s18 = smov %s1799_s25 }
 0x4ee   :  { %1064 = vsyncpa [#allocation4], 1 }
 0x4ef   :  { %1066 = vsyncpa [#allocation4 + $0x1], 1 }

</bundles_post_ra>
